<compile_context>
chip_gen: v7x
topology: tpu7x:2x2x1
jax: 0.10.0
libtpu: 0.0.40
codegen_flags: <defaults>
</compile_context>

<pallas_src>
import functools

import jax
import jax.numpy as jnp
from jax.experimental import pallas as pl
from jax.experimental.pallas import tpu as pltpu

HIDDEN = 256
LANE = 128


def _policy_kernel(x_ref, w1_ref, b1_ref, w2_ref, b2_ref, wh_ref, bh_ref,
                   out_ref, *, act_dim):
    # x_ref: (TB, obs_dim) tile of the state batch. bf16 MXU operands,
    # f32 accumulation; all elementwise math in f32.
    x = x_ref[...].astype(jnp.bfloat16)

    # linear1 + ReLU
    h1 = jnp.dot(x, w1_ref[...], preferred_element_type=jnp.float32) + b1_ref[...]
    h1 = jnp.maximum(h1, 0.0)

    # linear2 + ReLU
    h2 = jnp.dot(h1.astype(jnp.bfloat16), w2_ref[...],
                 preferred_element_type=jnp.float32) + b2_ref[...]
    h2 = jnp.maximum(h2, 0.0)

    # fused heads (lane-padded): columns [0, act_dim) = mean,
    # [act_dim, 2*act_dim) = log_std, the rest is zero padding.
    heads = jnp.dot(h2.astype(jnp.bfloat16), wh_ref[...],
                    preferred_element_type=jnp.float32) + bh_ref[...]

    # clamp(-10, 2) only on the log_std lanes via a lane mask (no lane-unaligned
    # slicing inside the kernel; pad lanes are discarded by the wrapper).
    col = jax.lax.broadcasted_iota(jnp.int32, heads.shape, 1)
    clipped = jnp.clip(heads, -10.0, 2.0)
    out_ref[...] = jnp.where(col >= act_dim, clipped, heads).astype(out_ref.dtype)


@functools.partial(jax.jit, static_argnames=("block_b",))
def gaussian_policy_forward(state, params, *, block_b=256):
    """Forward pass of GaussianPolicy: returns (mean, log_std)."""
    w1, b1, w2, b2, wm, bm, ws, bs = params
    B, obs_dim = state.shape
    act_dim = wm.shape[1]

    # bf16 weights: MXU peak dtype on v5e/v6e/v7x; weight DMA bytes halve.
    w1b = w1.astype(jnp.bfloat16)
    w2b = w2.astype(jnp.bfloat16)

    # Fuse the two heads into one weight / bias and pad the column (lane) axis
    # up to a multiple of 128 so the output slab is lane-dense (unmasked stores).
    head_w = max(LANE, pl.cdiv(2 * act_dim, LANE) * LANE)
    pad = head_w - 2 * act_dim
    wh = jnp.concatenate([wm, ws], axis=1)
    bh = jnp.concatenate([bm, bs], axis=1)
    if pad:
        wh = jnp.pad(wh, ((0, 0), (0, pad)))
        bh = jnp.pad(bh, ((0, 0), (0, pad)))
    wh = wh.astype(jnp.bfloat16)

    # Batch tile: fill the MXU (block_b=256 default); clamp to B for small
    # batches (full-extent block is always legal).
    tb = B if B <= block_b else block_b
    grid = (pl.cdiv(B, tb),)

    full = lambda shape: pl.BlockSpec(shape, lambda i: (0, 0))

    out = pl.pallas_call(
        functools.partial(_policy_kernel, act_dim=act_dim),
        out_shape=jax.ShapeDtypeStruct((B, head_w), jnp.float32),
        grid_spec=pltpu.PrefetchScalarGridSpec(
            num_scalar_prefetch=0,
            grid=grid,
            in_specs=[
                pl.BlockSpec((tb, obs_dim), lambda i: (i, 0)),  # state tile
                full((obs_dim, HIDDEN)),      # W1 (bf16)
                full((1, HIDDEN)),            # b1 (f32)
                full((HIDDEN, HIDDEN)),       # W2 (bf16)
                full((1, HIDDEN)),            # b2 (f32)
                full((HIDDEN, head_w)),       # [Wm | Ws | 0-pad] (bf16)
                full((1, head_w)),            # [bm | bs | 0-pad] (f32)
            ],
            out_specs=pl.BlockSpec((tb, head_w), lambda i: (i, 0)),
        ),
        compiler_params=pltpu.CompilerParams(
            dimension_semantics=("parallel",)),
    )(state, w1b, b1, w2b, b2, wh, bh)

    mean = out[:, :act_dim]
    log_std = out[:, act_dim:2 * act_dim]
    return mean, log_std


def init_params(key, obs_dim, act_dim):
    """Xavier-uniform weights (gain=1), zero biases — matches weights_init."""
    def xavier(key, fan_in, fan_out):
        limit = jnp.sqrt(6.0 / (fan_in + fan_out))
        # stored as [in, out] (pre-transposed relative to PyTorch's [out, in])
        return jax.random.uniform(key, (fan_in, fan_out), jnp.float32,
                                  minval=-limit, maxval=limit)

    k1, k2, k3, k4 = jax.random.split(key, 4)
    w1 = xavier(k1, obs_dim, HIDDEN)
    b1 = jnp.zeros((1, HIDDEN), jnp.float32)
    w2 = xavier(k2, HIDDEN, HIDDEN)
    b2 = jnp.zeros((1, HIDDEN), jnp.float32)
    wm = xavier(k3, HIDDEN, act_dim)
    bm = jnp.zeros((1, act_dim), jnp.float32)
    ws = xavier(k4, HIDDEN, act_dim)
    bs = jnp.zeros((1, act_dim), jnp.float32)
    return (w1, b1, w2, b2, wm, bm, ws, bs)


def _reference(state, params):
    # pure f32 reference (kernel uses bf16 matmul operands -> loose tolerance)
    w1, b1, w2, b2, wm, bm, ws, bs = params
    h1 = jnp.maximum(state @ w1 + b1, 0.0)
    h2 = jnp.maximum(h1 @ w2 + b2, 0.0)
    mean = h2 @ wm + bm
    log_std = jnp.clip(h2 @ ws + bs, -10.0, 2.0)
    return mean, log_std


if __name__ == "__main__":
    key = jax.random.PRNGKey(0)
    k_params, k_state = jax.random.split(key)

    obs_dim, act_dim, batch = 16, 4, 8
    params = init_params(k_params, obs_dim, act_dim)
    state = jax.random.normal(k_state, (batch, obs_dim), jnp.float32)

    mean, log_std = gaussian_policy_forward(state, params)
    jax.block_until_ready((mean, log_std))

    ref_mean, ref_log_std = _reference(state, params)
    assert mean.shape == (batch, act_dim) and log_std.shape == (batch, act_dim)
    # bf16 matmul operands (f32 accumulate) -> tolerance loosened vs f32 ref.
    assert jnp.allclose(mean, ref_mean, atol=5e-2, rtol=5e-2)
    assert jnp.allclose(log_std, ref_log_std, atol=5e-2, rtol=5e-2)
    assert jnp.all(log_std >= -10.0) and jnp.all(log_std <= 2.0)

    # TODO(synk): get_action (rsample / tanh-squashed log_prob) is a sampling
    # routine outside the forward() hot path and is not implemented in-kernel.
    print("KERNEL_OK")
</pallas_src>

<mosaic_0001>
module attributes {stable_mosaic.version = 11 : i64} {
  func.func @_policy_kernel(%arg0: i32, %arg1: memref<8x16xf32, #tpu.memory_space<vmem>>, %arg2: memref<16x256xbf16, #tpu.memory_space<vmem>>, %arg3: memref<1x256xf32, #tpu.memory_space<vmem>>, %arg4: memref<256x256xbf16, #tpu.memory_space<vmem>>, %arg5: memref<1x256xf32, #tpu.memory_space<vmem>>, %arg6: memref<256x128xbf16, #tpu.memory_space<vmem>>, %arg7: memref<1x128xf32, #tpu.memory_space<vmem>>, %arg8: memref<8x128xf32, #tpu.memory_space<vmem>>) attributes {dimension_semantics = [#tpu.dimension_semantics<parallel>], iteration_bounds = array<i64: 1>, scalar_prefetch = 0 : i64, scratch_operands = 0 : i64, tpu.core_type = #tpu.core_type<tc>, window_params = [{transform_indices = @transform_0, window_bounds = array<i64: 8, 16>}, {pipeline_mode = #tpu.pipeline_mode<synchronous>, transform_indices = @transform_1, window_bounds = array<i64: 16, 256>}, {pipeline_mode = #tpu.pipeline_mode<synchronous>, transform_indices = @transform_2, window_bounds = array<i64: 1, 256>}, {pipeline_mode = #tpu.pipeline_mode<synchronous>, transform_indices = @transform_3, window_bounds = array<i64: 256, 256>}, {pipeline_mode = #tpu.pipeline_mode<synchronous>, transform_indices = @transform_4, window_bounds = array<i64: 1, 256>}, {pipeline_mode = #tpu.pipeline_mode<synchronous>, transform_indices = @transform_5, window_bounds = array<i64: 256, 128>}, {pipeline_mode = #tpu.pipeline_mode<synchronous>, transform_indices = @transform_6, window_bounds = array<i64: 1, 128>}, {transform_indices = @transform_7, window_bounds = array<i64: 8, 128>}]} {
    %c0 = arith.constant 0 : index
    %c0_0 = arith.constant 0 : index
    %0 = vector.load %arg1[%c0, %c0_0] : memref<8x16xf32, #tpu.memory_space<vmem>>, vector<8x16xf32>
    %1 = arith.truncf %0 : vector<8x16xf32> to vector<8x16xbf16>
    %c0_1 = arith.constant 0 : index
    %c0_2 = arith.constant 0 : index
    %2 = vector.load %arg2[%c0_1, %c0_2] : memref<16x256xbf16, #tpu.memory_space<vmem>>, vector<16x256xbf16>
    %cst = arith.constant dense<0.000000e+00> : vector<8x256xf32>
    %3 = tpu.matmul %1, %2, %cst {dimension_numbers = #tpu.dot_dimension_numbers<[1], [0], [0], [1], [0, 0, 1, 1], [], []>} : vector<8x16xbf16>, vector<16x256xbf16>, vector<8x256xf32> -> vector<8x256xf32>
    %c0_3 = arith.constant 0 : index
    %c0_4 = arith.constant 0 : index
    %4 = vector.load %arg3[%c0_3, %c0_4] : memref<1x256xf32, #tpu.memory_space<vmem>>, vector<1x256xf32>
    %5 = vector.broadcast %4 : vector<1x256xf32> to vector<8x256xf32>
    %6 = arith.addf %3, %5 : vector<8x256xf32>
    %cst_5 = arith.constant 0.000000e+00 : f32
    %7 = vector.broadcast %cst_5 : f32 to vector<8x256xf32>
    %8 = arith.maximumf %6, %7 : vector<8x256xf32>
    %9 = arith.truncf %8 : vector<8x256xf32> to vector<8x256xbf16>
    %c0_6 = arith.constant 0 : index
    %c0_7 = arith.constant 0 : index
    %10 = vector.load %arg4[%c0_6, %c0_7] : memref<256x256xbf16, #tpu.memory_space<vmem>>, vector<256x256xbf16>
    %cst_8 = arith.constant dense<0.000000e+00> : vector<8x256xf32>
    %11 = tpu.matmul %9, %10, %cst_8 {dimension_numbers = #tpu.dot_dimension_numbers<[1], [0], [0], [1], [0, 0, 1, 1], [], []>} : vector<8x256xbf16>, vector<256x256xbf16>, vector<8x256xf32> -> vector<8x256xf32>
    %c0_9 = arith.constant 0 : index
    %c0_10 = arith.constant 0 : index
    %12 = vector.load %arg5[%c0_9, %c0_10] : memref<1x256xf32, #tpu.memory_space<vmem>>, vector<1x256xf32>
    %13 = vector.broadcast %12 : vector<1x256xf32> to vector<8x256xf32>
    %14 = arith.addf %11, %13 : vector<8x256xf32>
    %cst_11 = arith.constant 0.000000e+00 : f32
    %15 = vector.broadcast %cst_11 : f32 to vector<8x256xf32>
    %16 = arith.maximumf %14, %15 : vector<8x256xf32>
    %17 = arith.truncf %16 : vector<8x256xf32> to vector<8x256xbf16>
    %c0_12 = arith.constant 0 : index
    %c0_13 = arith.constant 0 : index
    %18 = vector.load %arg6[%c0_12, %c0_13] : memref<256x128xbf16, #tpu.memory_space<vmem>>, vector<256x128xbf16>
    %cst_14 = arith.constant dense<0.000000e+00> : vector<8x128xf32>
    %19 = tpu.matmul %17, %18, %cst_14 {dimension_numbers = #tpu.dot_dimension_numbers<[1], [0], [0], [1], [0, 0, 1, 1], [], []>} : vector<8x256xbf16>, vector<256x128xbf16>, vector<8x128xf32> -> vector<8x128xf32>
    %c0_15 = arith.constant 0 : index
    %c0_16 = arith.constant 0 : index
    %20 = vector.load %arg7[%c0_15, %c0_16] : memref<1x128xf32, #tpu.memory_space<vmem>>, vector<1x128xf32>
    %21 = vector.broadcast %20 : vector<1x128xf32> to vector<8x128xf32>
    %22 = arith.addf %19, %21 : vector<8x128xf32>
    %23 = tpu.iota {dimensions = array<i32: 1>} : vector<8x128xi32>
    %cst_17 = arith.constant -1.000000e+01 : f32
    %cst_18 = arith.constant 2.000000e+00 : f32
    %24 = vector.broadcast %cst_17 : f32 to vector<8x128xf32>
    %25 = arith.maximumf %24, %22 : vector<8x128xf32>
    %26 = vector.broadcast %cst_18 : f32 to vector<8x128xf32>
    %27 = arith.minimumf %26, %25 : vector<8x128xf32>
    %c4_i32 = arith.constant 4 : i32
    %28 = vector.broadcast %c4_i32 : i32 to vector<8x128xi32>
    %29 = arith.cmpi sge, %23, %28 : vector<8x128xi32>
    %30 = arith.select %29, %27, %22 : vector<8x128xi1>, vector<8x128xf32>
    %c0_19 = arith.constant 0 : index
    %c0_20 = arith.constant 0 : index
    %31 = vector.load %arg8[%c0_19, %c0_20] : memref<8x128xf32, #tpu.memory_space<vmem>>, vector<8x128xf32>
    tpu.vector_store %arg8[%c0_19, %c0_20], %30 {strides = array<i32>} : memref<8x128xf32, #tpu.memory_space<vmem>>, vector<8x128xf32>,
    return
  }
  func.func @transform_0(%arg0: i32) -> (i32, i32) {
    %c0_i32 = arith.constant 0 : i32
    %c0_i32_0 = arith.constant 0 : i32
    return %arg0, %c0_i32 : i32, i32
  }
  func.func @transform_1(%arg0: i32) -> (i32, i32) {
    %c0_i32 = arith.constant 0 : i32
    %c0_i32_0 = arith.constant 0 : i32
    %c0_i32_1 = arith.constant 0 : i32
    return %c0_i32, %c0_i32_0 : i32, i32
  }
  func.func @transform_2(%arg0: i32) -> (i32, i32) {
    %c0_i32 = arith.constant 0 : i32
    %c0_i32_0 = arith.constant 0 : i32
    %c0_i32_1 = arith.constant 0 : i32
    return %c0_i32, %c0_i32_0 : i32, i32
  }
  func.func @transform_3(%arg0: i32) -> (i32, i32) {
    %c0_i32 = arith.constant 0 : i32
    %c0_i32_0 = arith.constant 0 : i32
    %c0_i32_1 = arith.constant 0 : i32
    return %c0_i32, %c0_i32_0 : i32, i32
  }
  func.func @transform_4(%arg0: i32) -> (i32, i32) {
    %c0_i32 = arith.constant 0 : i32
    %c0_i32_0 = arith.constant 0 : i32
    %c0_i32_1 = arith.constant 0 : i32
    return %c0_i32, %c0_i32_0 : i32, i32
  }
  func.func @transform_5(%arg0: i32) -> (i32, i32) {
    %c0_i32 = arith.constant 0 : i32
    %c0_i32_0 = arith.constant 0 : i32
    %c0_i32_1 = arith.constant 0 : i32
    return %c0_i32, %c0_i32_0 : i32, i32
  }
  func.func @transform_6(%arg0: i32) -> (i32, i32) {
    %c0_i32 = arith.constant 0 : i32
    %c0_i32_0 = arith.constant 0 : i32
    %c0_i32_1 = arith.constant 0 : i32
    return %c0_i32, %c0_i32_0 : i32, i32
  }
  func.func @transform_7(%arg0: i32) -> (i32, i32) {
    %c0_i32 = arith.constant 0 : i32
    %c0_i32_0 = arith.constant 0 : i32
    return %arg0, %c0_i32 : i32, i32
  }
}

</mosaic_0001>

<bundles_post_ra>
// kernel: gaussian_policy_forward.1
= control target key start
LH: loop header
LB: loop body
LE: loop exit
PB: predicated region body
PF: predicated region fallthrough
CT: control target
= control target key end

     0   :  { %v679_v1 = vmov 0   ;;  %vm53_vm0 = vcmask 130048   ;;  %v33_v49 = vlaneseq  ;;  %s885_s1 = inlined_call_operand.vmem [shape: bf16[16,256], index: 1, kind: input, shape index: {}]   ;;  %s886_s0 = inlined_call_operand.vmem [shape: f32[8,16], index: 0, kind: input, shape index: {}]   ;;  %s887_s3 = inlined_call_operand.vmem [shape: bf16[256,256], index: 3, kind: input, shape index: {}]   ;;  %s888_s5 = inlined_call_operand.vmem [shape: bf16[256,128], index: 5, kind: input, shape index: {}]   ;;  %s889_s2 = inlined_call_operand.vmem [shape: f32[1,256], index: 2, kind: input, shape index: {}]   ;;  %s890_s4 = inlined_call_operand.vmem [shape: f32[1,256], index: 4, kind: input, shape index: {}]   ;;  %s891_s6 = inlined_call_operand.vmem [shape: f32[1,128], index: 6, kind: input, shape index: {}]   ;;  %s892_s7 = inlined_call_operand.vmem [shape: f32[8,128], index: 7, kind: output, shape index: {}]  }
   0x1   :  { %v612_v0 = vld [vmem:[%s885_s1 + $0x4] ss:$8 sps:$4 sm:$0xff]   ;;  %89 = vmatprep.mubr.bf16.mxu0 %v679_v1  ;;  %v614_v2 = vld [vmem:[%s885_s1] ss:$8 sps:$4 sm:$0xff]   ;;  %v618_v7 = vld [vmem:[%s887_s3 + $0x14] ss:$8 sps:$4 sm:$0xff]  }
   0x2   :  { %v27_v3 = vld [vmem:[%s886_s0] sm:$0xff]  ;;  %57 = vmatprep.subr.bf16.mxu0 %v612_v0  ;;  %v620_v8 = vld [vmem:[%s887_s3 + $0x10] ss:$8 sps:$4 sm:$0xff]   ;;  %v624_v11 = vld [vmem:[%s887_s3 + $0x34] ss:$8 sps:$4 sm:$0xff]   ;;  %v34_v50 = vshrl.u32 %v33_v49, 7 }
   0x3   :  { %v28_v4 = vpack.c.bf16 %v27_v3, %v27_v3  ;;  %v615_v5 = vld [vmem:[%s887_s3 + $0x4] ss:$8 sps:$4 sm:$0xff]   ;;  %v617_v6 = vld [vmem:[%s887_s3] ss:$8 sps:$4 sm:$0xff]   ;;  %58 = vmatpush1.bf16.msra.mxu0 %v614_v2  ;;  %v626_v12 = vld [vmem:[%s887_s3 + $0x30] ss:$8 sps:$4 sm:$0xff]  }
   0x4   :  { %306 = vmatprep.subr.bf16.mxu1 %v615_v5  ;;  %v621_v9 = vld [vmem:[%s887_s3 + $0x24] ss:$8 sps:$4 sm:$0xff]   ;;  %v623_v10 = vld [vmem:[%s887_s3 + $0x20] ss:$8 sps:$4 sm:$0xff]   ;;  %v630_v15 = vld [vmem:[%s887_s3 + $0x54] ss:$8 sps:$4 sm:$0xff]  }
   0x5   :  { %307 = vmatpush1.bf16.msra.mxu1 %v617_v6  ;;  %v627_v13 = vld [vmem:[%s887_s3 + $0x44] ss:$8 sps:$4 sm:$0xff]   ;;  %v629_v14 = vld [vmem:[%s887_s3 + $0x40] ss:$8 sps:$4 sm:$0xff]   ;;  %v632_v16 = vld [vmem:[%s887_s3 + $0x50] ss:$8 sps:$4 sm:$0xff]  }
   0x6   :  { %539 = vmatmul.mubr.msk.bf16.vlgmr.msra.gmra.mrb[0].mxu0 %vm53_vm0, %v28_v4  ;;  %308 = vmatprep.subr.bf16.mxu1 %v618_v7  ;;  %v633_v17 = vld [vmem:[%s887_s3 + $0x64] ss:$8 sps:$4 sm:$0xff]   ;;  %v635_v18 = vld [vmem:[%s887_s3 + $0x60] ss:$8 sps:$4 sm:$0xff]   ;;  %v636_v19 = vld [vmem:[%s887_s3 + $0x74] ss:$8 sps:$4 sm:$0xff]  }
   0x7   :  { %v638_v20 = vld [vmem:[%s887_s3 + $0x70] ss:$8 sps:$4 sm:$0xff]   ;;  %v639_v21 = vld [vmem:[%s887_s3 + $0x84] ss:$8 sps:$4 sm:$0xff]   ;;  %v641_v22 = vld [vmem:[%s887_s3 + $0x80] ss:$8 sps:$4 sm:$0xff]  }
   0x8   :  { %v642_v23 = vld [vmem:[%s887_s3 + $0x94] ss:$8 sps:$4 sm:$0xff]   ;;  %v644_v24 = vld [vmem:[%s887_s3 + $0x90] ss:$8 sps:$4 sm:$0xff]   ;;  %v645_v25 = vld [vmem:[%s887_s3 + $0xa4] ss:$8 sps:$4 sm:$0xff]  }
   0x9   :  { %309 = vmatpush1.bf16.msra.mxu1 %v620_v8  ;;  %v647_v26 = vld [vmem:[%s887_s3 + $0xa0] ss:$8 sps:$4 sm:$0xff]   ;;  %v648_v27 = vld [vmem:[%s887_s3 + $0xb4] ss:$8 sps:$4 sm:$0xff]   ;;  %v650_v28 = vld [vmem:[%s887_s3 + $0xb0] ss:$8 sps:$4 sm:$0xff]  }
   0xa   :  { %310 = vmatprep.subr.bf16.mxu1 %v621_v9  ;;  %v651_v29 = vld [vmem:[%s887_s3 + $0xc4] ss:$8 sps:$4 sm:$0xff]   ;;  %v653_v30 = vld [vmem:[%s887_s3 + $0xc0] ss:$8 sps:$4 sm:$0xff]   ;;  %v654_v31 = vld [vmem:[%s887_s3 + $0xd4] ss:$8 sps:$4 sm:$0xff]  }
   0xb   :  { %v656_v32 = vld [vmem:[%s887_s3 + $0xd0] ss:$8 sps:$4 sm:$0xff]   ;;  %v657_v33 = vld [vmem:[%s887_s3 + $0xe4] ss:$8 sps:$4 sm:$0xff]   ;;  %v659_v34 = vld [vmem:[%s887_s3 + $0xe0] ss:$8 sps:$4 sm:$0xff]  }
   0xc   :  { %v660_v35 = vld [vmem:[%s887_s3 + $0xf4] ss:$8 sps:$4 sm:$0xff]   ;;  %v662_v36 = vld [vmem:[%s887_s3 + $0xf0] ss:$8 sps:$4 sm:$0xff]   ;;  %v663_v37 = vld [vmem:[%s888_s5 + $0x40] sm:$0xff]   ;;  %v35_v51 = vsub.s32 0, %v34_v50 }
   0xd   :  { %311 = vmatpush1.bf16.msra.mxu1 %v623_v10  ;;  %v664_v38 = vld [vmem:[%s888_s5] sm:$0xff]   ;;  %589 = vmatprep.subr.bf16.mxu0 %v663_v37  ;;  %v665_v39 = vld [vmem:[%s888_s5 + $0x48] sm:$0xff]   ;;  %v667_v41 = vld [vmem:[%s888_s5 + $0x50] sm:$0xff]   ;;  %v39_v53 = vsub.s32 1, %v34_v50 }
   0xe   :  { %312 = vmatprep.subr.bf16.mxu1 %v624_v11  ;;  %590 = vmatpush3.bf16.msra.mxu0 %v664_v38  ;;  %v666_v40 = vld [vmem:[%s888_s5 + $0x8] sm:$0xff]   ;;  %v668_v42 = vld [vmem:[%s888_s5 + $0x10] sm:$0xff]   ;;  %v669_v43 = vld [vmem:[%s888_s5 + $0x58] sm:$0xff]  }
   0xf   :  { %591 = vmatprep.subr.bf16.mxu0 %v665_v39  ;;  %v670_v44 = vld [vmem:[%s888_s5 + $0x18] sm:$0xff]   ;;  %v671_v45 = vld [vmem:[%s888_s5 + $0x60] sm:$0xff]   ;;  %v673_v47 = vld [vmem:[%s888_s5 + $0x68] sm:$0xff]  }
  0x10   :  { %v672_v46 = vld [vmem:[%s888_s5 + $0x20] sm:$0xff]   ;;  %v674_v48 = vld [vmem:[%s888_s5 + $0x28] sm:$0xff]   ;;  %v675_v2 = vld [vmem:[%s888_s5 + $0x70] sm:$0xff]  }
  0x11   :  { %313 = vmatpush1.bf16.msra.mxu1 %v626_v12  ;;  %v31_v52 = vld [vmem:[%s889_s2] sm:$0x3]  ;;  %v676_v3 = vld [vmem:[%s888_s5 + $0x30] sm:$0xff]   ;;  %v677_v4 = vld [vmem:[%s888_s5 + $0x78] sm:$0xff]  }
  0x12   :  { %314 = vmatprep.subr.bf16.mxu1 %v627_v13  ;;  %592 = vmatpush3.bf16.msra.mxu0 %v666_v40  ;;  %v36_v54 = vrot.slane %v31_v52, %v35_v51  ;;  %v40_v55 = vrot.slane %v31_v52, %v39_v53  ;;  %v678_v5 = vld [vmem:[%s888_s5 + $0x38] sm:$0xff]   ;;  %v134_v6 = vld [vmem:[%s890_s4] sm:$0x3] }
  0x13   :  { %593 = vmatprep.subr.bf16.mxu0 %v667_v41  ;;  %v139_v7 = vrot.slane %v134_v6, %v35_v51  ;;  %v143_v8 = vrot.slane %v134_v6, %v39_v53 }
  0x15   :  { %315 = vmatpush1.bf16.msra.mxu1 %v629_v14 }
  0x16   :  { %316 = vmatprep.subr.bf16.mxu1 %v630_v15  ;;  %594 = vmatpush3.bf16.msra.mxu0 %v668_v42 }
  0x17   :  { %595 = vmatprep.subr.bf16.mxu0 %v669_v43 }
  0x19   :  { %317 = vmatpush1.bf16.msra.mxu1 %v632_v16 }
  0x1a   :  { %318 = vmatprep.subr.bf16.mxu1 %v633_v17  ;;  %596 = vmatpush3.bf16.msra.mxu0 %v670_v44 }
  0x1b   :  { %597 = vmatprep.subr.bf16.mxu0 %v671_v45 }
  0x1d   :  { %319 = vmatpush1.bf16.msra.mxu1 %v635_v18 }
  0x1e   :  { %320 = vmatprep.subr.bf16.mxu1 %v636_v19  ;;  %598 = vmatpush3.bf16.msra.mxu0 %v672_v46 }
  0x1f   :  { %599 = vmatprep.subr.bf16.mxu0 %v673_v47 }
  0x21   :  { %321 = vmatpush1.bf16.msra.mxu1 %v638_v20  ;;  %v572_v20 = vld [vmem:[%s891_s6] ss:$0 sm:$0xff] }
  0x22   :  { %322 = vmatprep.subr.bf16.mxu1 %v639_v21  ;;  %600 = vmatpush3.bf16.msra.mxu0 %v674_v48 }
  0x23   :  { %601 = vmatprep.subr.bf16.mxu0 %v675_v2 }
  0x25   :  { %323 = vmatpush1.bf16.msra.mxu1 %v641_v22 }
  0x26   :  { %324 = vmatprep.subr.bf16.mxu1 %v642_v23  ;;  %602 = vmatpush3.bf16.msra.mxu0 %v676_v3 }
  0x27   :  { %603 = vmatprep.subr.bf16.mxu0 %v677_v4 }
  0x29   :  { %325 = vmatpush1.bf16.msra.mxu1 %v644_v24  ;;  %v527_v24 = vand.u32 127, %v33_v49 }
  0x2a   :  { %326 = vmatprep.subr.bf16.mxu1 %v645_v25  ;;  %604 = vmatpush3.bf16.msra.mxu0 %v678_v5 }
  0x2b   :  { %vm530_vm1 = vcmp.ge.s32.totalorder %v527_v24, 4 }
  0x2d   :  { %327 = vmatpush1.bf16.msra.mxu1 %v647_v26 }
  0x2e   :  { %328 = vmatprep.subr.bf16.mxu1 %v648_v27 }
  0x31   :  { %329 = vmatpush1.bf16.msra.mxu1 %v650_v28 }
  0x32   :  { %330 = vmatprep.subr.bf16.mxu1 %v651_v29 }
  0x35   :  { %331 = vmatpush1.bf16.msra.mxu1 %v653_v30 }
  0x36   :  { %332 = vmatprep.subr.bf16.mxu1 %v654_v31 }
  0x39   :  { %333 = vmatpush1.bf16.msra.mxu1 %v656_v32 }
  0x3a   :  { %334 = vmatprep.subr.bf16.mxu1 %v657_v33 }
  0x3d   :  { %335 = vmatpush1.bf16.msra.mxu1 %v659_v34 }
  0x3e   :  { %336 = vmatprep.subr.bf16.mxu1 %v660_v35 }
  0x41   :  { %337 = vmatpush1.bf16.msra.mxu1 %v662_v36 }
  0xd9   :  { %v91_v56 = vpop.f32.mrb[0].mxu0 }
  0xda   :  { %v92_v57 = vadd.f32 %v91_v56, %v36_v54  ;;  %v93_v58 = vpop.f32.mrb[1].mxu0 }
  0xdb   :  { %v94_v59 = vadd.f32 %v93_v58, %v40_v55  ;;  %v95_v60 = vpop.f32.mrb[2].mxu0 }
  0xdc   :  { %v98_v61 = vmax.f32 %v92_v57, 0.0  ;;  %v96_v62 = vpop.f32.mrb[3].mxu0 }
  0xdd   :  { %v99_v63 = vmax.f32 %v94_v59, 0.0 }
  0xde   :  { %v100_v1 = vpack.c.bf16 %v98_v61, %v98_v61 }
  0xdf   :  { %v101_v0 = vpack.c.bf16 %v99_v63, %v99_v63 }
  0xe1   :  { %338 = vmatprep.mubr.bf16.mxu1 %v101_v0 }
  0xe2   :  { %339 = vmatmul.mubr.bf16.vlgmr.msra.gmra.mrb[0].mxu1 %v100_v1 }
 0x1b5   :  { %v340_v9 = vpop.f32.mrb[0].mxu1 }
 0x1b6   :  { %v341_v10 = vadd.f32 %v340_v9, %v139_v7  ;;  %v342_v11 = vpop.f32.mrb[1].mxu1 }
 0x1b7   :  { %v343_v12 = vadd.f32 %v342_v11, %v143_v8  ;;  %v344_v13 = vpop.f32.mrb[2].mxu1 }
 0x1b8   :  { %v347_v14 = vmax.f32 %v341_v10, 0.0  ;;  %v345_v15 = vpop.f32.mrb[3].mxu1 }
 0x1b9   :  { %v348_v16 = vmax.f32 %v343_v12, 0.0 }
 0x1ba   :  { %v349_v18 = vpack.c.bf16 %v347_v14, %v347_v14 }
 0x1bb   :  { %v350_v17 = vpack.c.bf16 %v348_v16, %v348_v16 }
 0x1bd   :  { %518 = vmatprep.mubr.bf16.mxu0 %v350_v17 }
 0x1be   :  { %519 = vmatmul.mubr.bf16.vlgmr.msra.gmra.mrb[4].mxu0 %v349_v18 }
 0x291   :  { %v605_v19 = vpop.f32.mrb[4].mxu0 }
 0x292   :  { %v606_v21 = vpop.f32.mrb[5].mxu0 }
 0x293   :  { %v607_v22 = vadd.f32 %v606_v21, %v605_v19  ;;  %v608_v23 = vpop.f32.mrb[6].mxu0 }
 0x294   :  { %v609_v25 = vpop.f32.mrb[7].mxu0 }
 0x295   :  { %v521_v26 = vadd.f32 %v607_v22, %v572_v20 }
 0x297   :  { %v528_v27 = vmax.f32 %v521_v26, -10.0 }
 0x299   :  { %v529_v28 = vmin.f32 %v528_v27, 2.0 }
 0x29b   :  { %v531_v29 = vsel %vm530_vm1, %v529_v28, %v521_v26 }
 0x29c   :  { %532 = vst [vmem:[%s892_s7] sm:$0xff] %v531_v29 }

</bundles_post_ra>
